<compile_context>
chip_gen: v6e
topology: v6e:2x2x1
jax: 0.10.0
libtpu: 0.0.40
codegen_flags: <defaults>
</compile_context>

<pallas_src>
import functools

import jax
import jax.numpy as jnp
from jax import lax
from jax.experimental import pallas as pl
from jax.experimental.pallas import tpu as pltpu


def _round_up(a, m):
    return -(-a // m) * m


def _sublane_req(dtype):
    # f32 -> 8, bf16 -> 16, int8/fp8 -> 32 (sub-32-bit dtypes pack sublanes).
    return max(8, 32 // jnp.dtype(dtype).itemsize)


# ------------------------------------------------------------------ kernel ---
def _masked_l1_kernel(lens_ref, x_ref, y_ref, out_ref, *, t_total, tt):
    """Masked |x - y| partial sums for one (batch, time-tile) grid step.

    lens_ref : (B,)    int32 SMEM (scalar-prefetched) valid-frame counts
    x_ref    : (tt, D) time tile of x[b]
    y_ref    : (tt, D) time tile of y[b]
    out_ref  : (8, D)  f32 partial-sum slab for this grid step
    """
    b = pl.program_id(0)
    ti = pl.program_id(1)

    x = x_ref[...].astype(jnp.float32)
    y = y_ref[...].astype(jnp.float32)
    absdiff = jnp.abs(x - y)                               # (tt, D)

    # Valid frames: t < min(lens[b], T_common).  This also masks the tail of
    # the last (cdiv) time tile and any garbage rows of partial OOB blocks of
    # the longer (un-truncated) input.
    limit = jnp.minimum(lens_ref[b], t_total)
    row_id = ti * tt + lax.broadcasted_iota(jnp.int32, (tt, 1), 0)
    keep = row_id < limit                                  # (tt, 1) bool

    # where-select (not multiply) so NaN/garbage in masked rows cannot leak.
    contrib = jnp.where(keep, absdiff, 0.0)                # (tt, D)

    # Sublane-group reduction to an (8, D) slab via vreg-aligned static slices
    # and plain VPU adds (no retiling / hidden VMEM copy of the full tile).
    acc = contrib[0:8, :]
    for g in range(1, tt // 8):
        acc = acc + contrib[g * 8:(g + 1) * 8, :]
    out_ref[...] = acc


# ----------------------------------------------------------------- wrapper ---
@functools.partial(jax.jit, static_argnames=("tt",))
def loss_forward(x, y, x_lens, y_lens, target_mean, target_scale, *, tt=None):
    """Replicates Loss.forward (PyTorch) with a Pallas TPU reduction kernel.

    target_mean is kept for API parity with the PyTorch module; the mean
    cancels in the normalized difference so it never enters the computation.
    """
    del target_mean  # (x-m)/s - (y-m)/s == (x-y)/s
    B, Tx, D = x.shape
    _, Ty, _ = y.shape
    T = min(Tx, Ty)                       # common (truncated) length, static

    # Mask lengths follow the tensor that set the common length (the intent of
    # the original module: mask padded frames of the truncated pair).
    lens = (y_lens if Tx > Ty else x_lens).astype(jnp.int32)

    # ---- tile selection: static shape arithmetic, evaluated at trace time ---
    sub = max(_sublane_req(x.dtype), _sublane_req(y.dtype))
    d_lanes = _round_up(D, 128)                            # lane padding
    bytes_per_row = d_lanes * (jnp.dtype(x.dtype).itemsize
                               + jnp.dtype(y.dtype).itemsize)
    vmem_budget = 24 * 1024 * 1024        # double-buffered x+y stream budget
    cap_rows = max(sub, (vmem_budget // (2 * bytes_per_row)) // sub * sub)

    tt_eff = 1024 if tt is None else int(tt)
    tt_eff = min(tt_eff, cap_rows, _round_up(T, sub))
    tt_eff = max(sub, (tt_eff // sub) * sub)
    # Megacore (v7x): ensure >= 2 independent grid steps when splittable.
    if B * pl.cdiv(T, tt_eff) < 2 and T > sub:
        tt_eff = max(sub, _round_up(pl.cdiv(T, 2), sub))

    nt = pl.cdiv(T, tt_eff)
    kernel = functools.partial(_masked_l1_kernel, t_total=T, tt=tt_eff)

    partials = pl.pallas_call(
        kernel,
        out_shape=jax.ShapeDtypeStruct((B, nt * 8, D), jnp.float32),
        grid_spec=pltpu.PrefetchScalarGridSpec(
            num_scalar_prefetch=1,        # lens -> SMEM, first kernel arg
            grid=(B, nt),
            in_specs=[
                pl.BlockSpec((None, tt_eff, D), lambda b, t, lens: (b, t, 0)),
                pl.BlockSpec((None, tt_eff, D), lambda b, t, lens: (b, t, 0)),
            ],
            out_specs=pl.BlockSpec((None, 8, D), lambda b, t, lens: (b, t, 0)),
        ),
        compiler_params=pltpu.CompilerParams(
            dimension_semantics=("parallel", "parallel"),
            vmem_limit_bytes=32 * 1024 * 1024),
    )(lens, x, y)

    # |(x-m)/s - (y-m)/s| = |x-y| * |1/s|  (exact for any nonzero s).
    per_dim = jnp.sum(partials, axis=(0, 1))                       # (D,)
    inv_scale = jnp.abs(1.0 / target_scale.astype(jnp.float32))    # (D,)
    abs_sum = jnp.dot(per_dim, inv_scale)

    # L1Loss(reduction='mean') over masked_select: mean over (#valid frames)*D.
    cnt = jnp.sum(jnp.clip(lens, 0, T)).astype(jnp.float32)
    return abs_sum / (cnt * D)


# -------------------------------------------------------------------- main ---
if __name__ == "__main__":
    key = jax.random.PRNGKey(0)
    B, Tx, Ty, D = 2, 100, 96, 80

    k1, k2, k3, k4 = jax.random.split(key, 4)
    x = jax.random.normal(k1, (B, Tx, D), dtype=jnp.float32)
    y = jax.random.normal(k2, (B, Ty, D), dtype=jnp.float32)
    x_lens = jnp.array([100, 70], dtype=jnp.int32)
    y_lens = jnp.array([96, 57], dtype=jnp.int32)

    # Deterministic synthetic "stats" (sklearn StandardScaler-like): mean_, scale_
    target_mean = jax.random.normal(k3, (D,), dtype=jnp.float32)
    target_scale = jax.random.uniform(k4, (D,), minval=0.5, maxval=1.5,
                                      dtype=jnp.float32)

    # Pure-JAX reference with the original normalize-then-subtract formulation.
    def reference(xr, yr):
        T = min(xr.shape[1], yr.shape[1])
        lens = y_lens if xr.shape[1] > yr.shape[1] else x_lens
        mask = (jnp.arange(T)[None, :] < lens[:, None])[..., None]   # (B,T,1)
        xn = (xr[:, :T].astype(jnp.float32) - target_mean) / target_scale
        yn = (yr[:, :T].astype(jnp.float32) - target_mean) / target_scale
        return jnp.sum(jnp.abs(xn - yn) * mask) / (jnp.sum(mask) * D)

    ref = reference(x, y)

    # Default (large-tile) path: single time tile, grid = (B, 1).
    loss_default = jax.block_until_ready(
        loss_forward(x, y, x_lens, y_lens, target_mean, target_scale))
    # Small time tile to exercise the multi-tile + tail/OOB masking path
    # (tt=40 -> 3 time tiles, last tile overruns both Tx=100 and Ty=96).
    loss_tiled = jax.block_until_ready(
        loss_forward(x, y, x_lens, y_lens, target_mean, target_scale, tt=40))

    assert jnp.allclose(loss_default, ref, rtol=1e-4, atol=1e-6), (loss_default, ref)
    assert jnp.allclose(loss_tiled, ref, rtol=1e-4, atol=1e-6), (loss_tiled, ref)

    # bf16 feature path (half the HBM bytes; tile rounds to a sublane multiple
    # of 16, cast to f32 happens in-kernel).  Reference uses the same bf16-
    # quantized inputs so both sides do f32 math on identical values.
    x_bf = x.astype(jnp.bfloat16)
    y_bf = y.astype(jnp.bfloat16)
    ref_bf = reference(x_bf, y_bf)
    loss_bf = jax.block_until_ready(
        loss_forward(x_bf, y_bf, x_lens, y_lens, target_mean, target_scale))
    assert jnp.allclose(loss_bf, ref_bf, rtol=1e-4, atol=1e-6), (loss_bf, ref_bf)

    print("KERNEL_OK")
</pallas_src>

<mosaic_0001>
module attributes {stable_mosaic.version = 11 : i64} {
  func.func @_masked_l1_kernel(%arg0: i32, %arg1: i32, %arg2: memref<2xi32, #tpu.memory_space<smem>>, %arg3: memref<1x96x80xf32, #tpu.memory_space<vmem>>, %arg4: memref<1x96x80xf32, #tpu.memory_space<vmem>>, %arg5: memref<1x8x80xf32, #tpu.memory_space<vmem>>) attributes {dimension_semantics = [#tpu.dimension_semantics<parallel>, #tpu.dimension_semantics<parallel>], iteration_bounds = array<i64: 2, 1>, scalar_prefetch = 1 : i64, scratch_operands = 0 : i64, tpu.core_type = #tpu.core_type<tc>, window_params = [{transform_indices = @transform_0, window_bounds = array<i64: 1, 96, 80>}, {transform_indices = @transform_1, window_bounds = array<i64: 1, 96, 80>}, {transform_indices = @transform_2, window_bounds = array<i64: 1, 8, 80>}]} {
    %c0 = arith.constant 0 : index
    %c0_0 = arith.constant 0 : index
    %c0_1 = arith.constant 0 : index
    %0 = vector.load %arg3[%c0, %c0_0, %c0_1] : memref<1x96x80xf32, #tpu.memory_space<vmem>>, vector<1x96x80xf32>
    %1 = vector.shape_cast %0 : vector<1x96x80xf32> to vector<96x80xf32>
    %c0_2 = arith.constant 0 : index
    %c0_3 = arith.constant 0 : index
    %c0_4 = arith.constant 0 : index
    %2 = vector.load %arg4[%c0_2, %c0_3, %c0_4] : memref<1x96x80xf32, #tpu.memory_space<vmem>>, vector<1x96x80xf32>
    %3 = vector.shape_cast %2 : vector<1x96x80xf32> to vector<96x80xf32>
    %4 = arith.subf %1, %3 : vector<96x80xf32>
    %5 = math.absf %4 : vector<96x80xf32>
    %6 = arith.index_cast %arg0 : i32 to index
    %7 = memref.load %arg2[%6] : memref<2xi32, #tpu.memory_space<smem>>
    %c96_i32 = arith.constant 96 : i32
    %8 = arith.minsi %7, %c96_i32 : i32
    %c96_i32_5 = arith.constant 96 : i32
    %9 = arith.muli %arg1, %c96_i32_5 : i32
    %10 = tpu.iota {dimensions = array<i32: 0>} : vector<96x1xi32>
    %11 = vector.broadcast %9 : i32 to vector<96x1xi32>
    %12 = arith.addi %11, %10 : vector<96x1xi32>
    %13 = vector.broadcast %8 : i32 to vector<96x1xi32>
    %14 = arith.cmpi slt, %12, %13 : vector<96x1xi32>
    %cst = arith.constant 0.000000e+00 : f32
    %15 = vector.shape_cast %14 : vector<96x1xi1> to vector<96x1xi1>
    %16 = vector.broadcast %15 : vector<96x1xi1> to vector<96x80xi1>
    %17 = vector.broadcast %cst : f32 to vector<96x80xf32>
    %18 = arith.select %16, %5, %17 : vector<96x80xi1>, vector<96x80xf32>
    %19 = vector.extract_strided_slice %18 {offsets = [0, 0], sizes = [8, 80], strides = [1, 1]} : vector<96x80xf32> to vector<8x80xf32>
    %20 = vector.extract_strided_slice %18 {offsets = [8, 0], sizes = [8, 80], strides = [1, 1]} : vector<96x80xf32> to vector<8x80xf32>
    %21 = arith.addf %19, %20 : vector<8x80xf32>
    %22 = vector.extract_strided_slice %18 {offsets = [16, 0], sizes = [8, 80], strides = [1, 1]} : vector<96x80xf32> to vector<8x80xf32>
    %23 = arith.addf %21, %22 : vector<8x80xf32>
    %24 = vector.extract_strided_slice %18 {offsets = [24, 0], sizes = [8, 80], strides = [1, 1]} : vector<96x80xf32> to vector<8x80xf32>
    %25 = arith.addf %23, %24 : vector<8x80xf32>
    %26 = vector.extract_strided_slice %18 {offsets = [32, 0], sizes = [8, 80], strides = [1, 1]} : vector<96x80xf32> to vector<8x80xf32>
    %27 = arith.addf %25, %26 : vector<8x80xf32>
    %28 = vector.extract_strided_slice %18 {offsets = [40, 0], sizes = [8, 80], strides = [1, 1]} : vector<96x80xf32> to vector<8x80xf32>
    %29 = arith.addf %27, %28 : vector<8x80xf32>
    %30 = vector.extract_strided_slice %18 {offsets = [48, 0], sizes = [8, 80], strides = [1, 1]} : vector<96x80xf32> to vector<8x80xf32>
    %31 = arith.addf %29, %30 : vector<8x80xf32>
    %32 = vector.extract_strided_slice %18 {offsets = [56, 0], sizes = [8, 80], strides = [1, 1]} : vector<96x80xf32> to vector<8x80xf32>
    %33 = arith.addf %31, %32 : vector<8x80xf32>
    %34 = vector.extract_strided_slice %18 {offsets = [64, 0], sizes = [8, 80], strides = [1, 1]} : vector<96x80xf32> to vector<8x80xf32>
    %35 = arith.addf %33, %34 : vector<8x80xf32>
    %36 = vector.extract_strided_slice %18 {offsets = [72, 0], sizes = [8, 80], strides = [1, 1]} : vector<96x80xf32> to vector<8x80xf32>
    %37 = arith.addf %35, %36 : vector<8x80xf32>
    %38 = vector.extract_strided_slice %18 {offsets = [80, 0], sizes = [8, 80], strides = [1, 1]} : vector<96x80xf32> to vector<8x80xf32>
    %39 = arith.addf %37, %38 : vector<8x80xf32>
    %40 = vector.extract_strided_slice %18 {offsets = [88, 0], sizes = [8, 80], strides = [1, 1]} : vector<96x80xf32> to vector<8x80xf32>
    %41 = arith.addf %39, %40 : vector<8x80xf32>
    %c0_6 = arith.constant 0 : index
    %c0_7 = arith.constant 0 : index
    %c0_8 = arith.constant 0 : index
    %42 = vector.load %arg5[%c0_6, %c0_7, %c0_8] : memref<1x8x80xf32, #tpu.memory_space<vmem>>, vector<1x8x80xf32>
    %43 = vector.shape_cast %42 : vector<1x8x80xf32> to vector<8x80xf32>
    %44 = vector.shape_cast %41 : vector<8x80xf32> to vector<1x8x80xf32>
    tpu.vector_store %arg5[%c0_6, %c0_7, %c0_8], %44 {strides = array<i32>} : memref<1x8x80xf32, #tpu.memory_space<vmem>>, vector<1x8x80xf32>,
    return
  }
  func.func @transform_0(%arg0: i32, %arg1: i32, %arg2: memref<2xi32, #tpu.memory_space<smem>>) -> (i32, i32, i32) {
    %c0_i32 = arith.constant 0 : i32
    %c0_i32_0 = arith.constant 0 : i32
    return %arg0, %arg1, %c0_i32 : i32, i32, i32
  }
  func.func @transform_1(%arg0: i32, %arg1: i32, %arg2: memref<2xi32, #tpu.memory_space<smem>>) -> (i32, i32, i32) {
    %c0_i32 = arith.constant 0 : i32
    %c0_i32_0 = arith.constant 0 : i32
    return %arg0, %arg1, %c0_i32 : i32, i32, i32
  }
  func.func @transform_2(%arg0: i32, %arg1: i32, %arg2: memref<2xi32, #tpu.memory_space<smem>>) -> (i32, i32, i32) {
    %c0_i32 = arith.constant 0 : i32
    %c0_i32_0 = arith.constant 0 : i32
    return %arg0, %arg1, %c0_i32 : i32, i32, i32
  }
}

</mosaic_0001>

<bundles_post_ra>
// kernel: loss_forward.1
= control target key start
LH: loop header
LB: loop body
LE: loop exit
PB: predicated region body
PF: predicated region fallthrough
CT: control target
= control target key end

     0   :  { %s672_s0 = inlined_call_operand.vmem [shape: s32[2], index: 0, kind: input, shape index: {}]   ;;  %s673_s1 = inlined_call_operand.vmem [shape: f32[2,100,80], index: 1, kind: input, shape index: {}]   ;;  %s674_s2 = inlined_call_operand.vmem [shape: f32[2,96,80], index: 2, kind: input, shape index: {}]   ;;  %s675_s3 = inlined_call_operand.vmem [shape: f32[2,8,80], index: 3, kind: output, shape index: {}]  }
   0x1   :  { %s8_s14 = sshll.u32 %s672_s0, 4  ;;  %s9_s14 = int_to_ptr.vmem [resolvable:$true] %s8_s14 }
   0x2   :  { %s513_s15 = scalar_lea.vmem %s9_s14, 16  ;;  %p518_p1 = scmp.lt.s32.totalorder %s9_s14, %s9_s14 }
   0x3   :  { %p514_p0 = scmp.ne.s32.totalorder %s9_s14, %s513_s15  ;;  %p519_p2 = scmp.lt.s32.totalorder %s513_s15, %s513_s15 }
   0x5   :  { %p520_p3 = por %p519_p2, %p518_p1 }
   0x7   :  { %p521_p4 = pnand %p520_p3, %p514_p0 }
   0x9   :  { %524 = shalt.err (!%p521_p4)  }
   0xa   :  { %s551_s16 = smov [#allocation3]  }
   0xb   :  { %11 = dma.vmem_to_smem %s9_s14, 16, %s551_s16, [#allocation2] }
   0xc   :  { %537 = dma.done.wait [#allocation2], 16 }
   0xd   :  { %538 = vsyncadd [#allocation2], 4294967280 }
   0xe   :  { %13 = sfence }
   0xf   :  { %s575_s17 = smov 0   ;;  %s577_s18 = smov 0  }
  0x10   :  { %s579_s19 = smov 0  }
  0x11 LB: > { %s31_s0 = sadd.s32 1, %s545_s18  ;;  %p480_p5 = scmp.ge.s32.totalorder %s549_s19, 1  ;;  %s549_s19 = sphi %s579_s19, %s19_s19   ;;  %s545_s18 = sphi %s577_s18, %s677_s18   ;;  %s541_s17 = sphi %s575_s17, %s676_s17  }
  0x12   : > { %p33_p6 = scmp.ge.s32.totalorder %s31_s0, 2  ;;  %p165_p7 = scmp.lt.s32.totalorder %s549_s19, 3 }
  0x14   : > { %s679_s0 = smov (%p33_p6, %s31_s0), 0  ;;  %p166_p8 = pnand %p480_p5, %p165_p7 }
  0x15   : > { %p211_p9 = scmp.lt.s32.totalorder (!%p166_p8), %s541_s17, 1  ;;  %s289_s20 = sld [smem:[#allocation3 + %s541_s17]] (!%p166_p8) }
  0x16   : > { %169 = sbr.rel (%p166_p8) target bundleno = 61 (0x3d), region = 28 }
  0x1b   : > { %s681_s17 = smov (!%p211_p9, %s541_s17), 1  ;;  %v293_v0 = vlaneseq  ;;  %p290_p10 = scmp.lt.s32.totalorder %s289_s20, 96  ;;  %vm379_vm12 = vcmask 654336  }
  0x1c   : > { %s486_s21 = smul.u32 104, %s681_s17  ;;  %s483_s29 = sshll.u32 %s681_s17, 3 }
  0x1d   : > { %s487_s22 = smul.u32 96, %s681_s17  ;;  %v609_v3 = vshrl.u32 %v293_v0, 7  ;;  %s683_s20 = smov (!%p290_p10, %s289_s20), 96 }
  0x1e   : > { %s600_s25 = scalar_lea.vmem %s673_s1, %s486_s21  ;;  %v618_v14 = vstv %s683_s20  ;;  %s240_s5 = scalar_lea.vmem %s675_s3, %s483_s29 }
  0x1f   : > { %s605_s28 = scalar_lea.vmem %s674_s2, %s487_s22  ;;  %v241_v1 = vld [vmem:[%s600_s25] sm:$0xff]  ;;  %v242_v2 = vld [vmem:[%s600_s25 + $0x8] sm:$0xff]  ;;  %v243_v4 = vld [vmem:[%s600_s25 + $0x10] sm:$0xff]  ;;  %v295_v12 = vadd.s32 8, %v609_v3  ;;  %v296_v17 = vadd.s32 16, %v609_v3  ;;  %v297_v23 = vadd.s32 24, %v609_v3  ;;  %vm320_vm0 = vcmp.lt.s32.totalorder %v609_v3, %v618_v14 }
  0x20   : > { %v253_v5 = vld [vmem:[%s605_s28] sm:$0xff]  ;;  %v254_v6 = vld [vmem:[%s605_s28 + $0x8] sm:$0xff]  ;;  %v255_v7 = vld [vmem:[%s605_s28 + $0x10] sm:$0xff]  ;;  %v298_v28 = vadd.s32 32, %v609_v3  ;;  %v299_v35 = vadd.s32 40, %v609_v3  ;;  %v300_v41 = vadd.s32 48, %v609_v3 }
  0x21   : > { %v265_v8 = vsub.f32 %v241_v1, %v253_v5  ;;  %v266_v9 = vsub.f32 %v242_v2, %v254_v6  ;;  %v244_v10 = vld [vmem:[%s600_s25 + $0x18] sm:$0xff]  ;;  %v267_v13 = vsub.f32 %v243_v4, %v255_v7  ;;  %v245_v15 = vld [vmem:[%s600_s25 + $0x20] sm:$0xff]  ;;  %v246_v21 = vld [vmem:[%s600_s25 + $0x28] sm:$0xff]  ;;  %vm321_vm1 = vcmp.lt.s32.totalorder %v295_v12, %v618_v14 }
  0x22   : > { %v256_v11 = vld [vmem:[%s605_s28 + $0x18] sm:$0xff]  ;;  %v257_v16 = vld [vmem:[%s605_s28 + $0x20] sm:$0xff]  ;;  %v258_v22 = vld [vmem:[%s605_s28 + $0x28] sm:$0xff]  ;;  %vm322_vm2 = vcmp.lt.s32.totalorder %v296_v17, %v618_v14  ;;  %vm323_vm3 = vcmp.lt.s32.totalorder %v297_v23, %v618_v14  ;;  %vm324_vm4 = vcmp.lt.s32.totalorder %v298_v28, %v618_v14  ;;  %v301_v48 = vadd.s32 56, %v609_v3 }
  0x23   : > { %v268_v18 = vsub.f32 %v244_v10, %v256_v11  ;;  %v277_v19 = vand.u32 2147483647, %v265_v8  ;;  %v278_v20 = vand.u32 2147483647, %v266_v9  ;;  %v269_v24 = vsub.f32 %v245_v15, %v257_v16  ;;  %v247_v26 = vld [vmem:[%s600_s25 + $0x30] sm:$0xff]  ;;  %v248_v33 = vld [vmem:[%s600_s25 + $0x38] sm:$0xff] }
  0x24   : > { %v279_v25 = vand.u32 2147483647, %v267_v13  ;;  %v259_v27 = vld [vmem:[%s605_s28 + $0x30] sm:$0xff]  ;;  %v270_v29 = vsub.f32 %v246_v21, %v258_v22  ;;  %v260_v34 = vld [vmem:[%s605_s28 + $0x38] sm:$0xff]  ;;  %v249_v39 = vld [vmem:[%s600_s25 + $0x40] sm:$0xff]  ;;  %vm325_vm5 = vcmp.lt.s32.totalorder %v299_v35, %v618_v14  ;;  %v302_v55 = vadd.s32 64, %v609_v3 }
  0x25   : > { %v280_v30 = vand.u32 2147483647, %v268_v18  ;;  %v356_v31 = vsel %vm320_vm0, %v277_v19, 0.0  ;;  %v357_v32 = vsel %vm321_vm1, %v278_v20, 0.0  ;;  %v271_v36 = vsub.f32 %v247_v26, %v259_v27  ;;  %v261_v40 = vld [vmem:[%s605_s28 + $0x40] sm:$0xff]  ;;  %v250_v46 = vld [vmem:[%s600_s25 + $0x48] sm:$0xff] }
  0x26   : > { %v281_v37 = vand.u32 2147483647, %v269_v24  ;;  %v358_v38 = vsel %vm322_vm2, %v279_v25, 0.0  ;;  %v368_v42 = vadd.f32 %v357_v32, %v356_v31  ;;  %v272_v43 = vsub.f32 %v248_v33, %v260_v34  ;;  %v262_v47 = vld [vmem:[%s605_s28 + $0x48] sm:$0xff]  ;;  %v251_v53 = vld [vmem:[%s600_s25 + $0x50] sm:$0xff]  ;;  %v252_v60 = vld [vmem:[%s600_s25 + $0x58] sm:$0xff] }
  0x27   : > { %v282_v44 = vand.u32 2147483647, %v270_v29  ;;  %v359_v45 = vsel %vm323_vm3, %v280_v30, 0.0  ;;  %v273_v50 = vsub.f32 %v249_v39, %v261_v40  ;;  %v283_v51 = vand.u32 2147483647, %v271_v36  ;;  %v263_v54 = vld [vmem:[%s605_s28 + $0x50] sm:$0xff] }
  0x28   : > { %v369_v49 = vadd.f32 %v368_v42, %v358_v38  ;;  %v360_v52 = vsel %vm324_vm4, %v281_v37, 0.0  ;;  %vm326_vm6 = vcmp.lt.s32.totalorder %v300_v41, %v618_v14  ;;  %v274_v57 = vsub.f32 %v250_v46, %v262_v47  ;;  %v264_v61 = vld [vmem:[%s605_s28 + $0x58] sm:$0xff] }
  0x29   : > { %v284_v58 = vand.u32 2147483647, %v272_v43  ;;  %v361_v59 = vsel %vm325_vm5, %v282_v44, 0.0  ;;  %v303_v62 = vadd.s32 72, %v609_v3  ;;  %vm327_vm7 = vcmp.lt.s32.totalorder %v301_v48, %v618_v14 }
  0x2a   : > { %v370_v56 = vadd.f32 %v369_v49, %v359_v45  ;;  %v275_v0 = vsub.f32 %v251_v53, %v263_v54  ;;  %v285_v1 = vand.u32 2147483647, %v273_v50  ;;  %v362_v2 = vsel %vm326_vm6, %v283_v51, 0.0 }
  0x2b   : > { %v304_v4 = vadd.s32 80, %v609_v3  ;;  %vm328_vm8 = vcmp.lt.s32.totalorder %v302_v55, %v618_v14  ;;  %v276_v6 = vsub.f32 %v252_v60, %v264_v61  ;;  %v286_v7 = vand.u32 2147483647, %v274_v57 }
  0x2c   : > { %v371_v63 = vadd.f32 %v370_v56, %v360_v52  ;;  %v363_v8 = vsel %vm327_vm7, %v284_v58, 0.0  ;;  %v305_v9 = vadd.s32 88, %v609_v3  ;;  %vm329_vm9 = vcmp.lt.s32.totalorder %v303_v62, %v618_v14 }
  0x2d   : > { %v287_v11 = vand.u32 2147483647, %v275_v0  ;;  %v364_v12 = vsel %vm328_vm8, %v285_v1, 0.0  ;;  %vm330_vm10 = vcmp.lt.s32.totalorder %v304_v4, %v618_v14  ;;  %v288_v15 = vand.u32 2147483647, %v276_v6 }
  0x2e   : > { %v372_v5 = vadd.f32 %v371_v63, %v361_v59  ;;  %v365_v16 = vsel %vm329_vm9, %v286_v7, 0.0  ;;  %vm331_vm11 = vcmp.lt.s32.totalorder %v305_v9, %v618_v14 }
  0x2f   : > { %v366_v18 = vsel %vm330_vm10, %v287_v11, 0.0  ;;  %v367_v20 = vsel %vm331_vm11, %v288_v15, 0.0 }
  0x30   : > { %v373_v10 = vadd.f32 %v372_v5, %v362_v2 }
  0x32   : > { %v374_v13 = vadd.f32 %v373_v10, %v363_v8 }
  0x34   : > { %v375_v17 = vadd.f32 %v374_v13, %v364_v12 }
  0x36   : > { %v376_v19 = vadd.f32 %v375_v17, %v365_v16 }
  0x38   : > { %v377_v21 = vadd.f32 %v376_v19, %v366_v18 }
  0x3a   : > { %v378_v3 = vadd.f32 %v377_v21, %v367_v20 }
  0x3c   : > { %380 = vst.msk [vmem:[%s240_s5] sm:$0xff] %vm379_vm12, %v378_v3 }
  0x3d PF: > { %s19_s19 = sadd.s32 1, %s549_s19   ;;  %s676_s17 = smov %s545_s18 }
  0x3e   : > { %p16_p11 = scmp.ge.s32.totalorder %s19_s19, 4   ;;  %s677_s18 = smov %s679_s0 }
  0x40   :  { %18 = sbr.rel (!%p16_p11) target bundleno = 17 (0x11), region = 61 }

</bundles_post_ra>
